<compile_context>
chip_gen: v7x
topology: tpu7x:2x2x1
jax: 0.10.0
libtpu: 0.0.40
codegen_flags: <defaults>
</compile_context>

<pallas_src>
import numpy as np
import jax
import jax.numpy as jnp
from jax import lax
from jax.experimental import pallas as pl
from jax.experimental.pallas import tpu as pltpu
from jax.scipy.stats import norm as _jnorm

EPS = 1.0 / 255.0    # parity with __init__ (unused in the default forward)
TAU = 0.95
WEIGHT = 0.5         # only used by the separate_loss=True branch


def get_gaussian_kernel(size=5, sigma=2):
    """Deterministic re-creation of the module's gaussian_kernel parameter,
    shape (1, 1, size, size), float32. (Unused in the default forward path.)"""
    interval = (2 * sigma + 1.0) / size
    x = np.linspace(-sigma - interval / 2.0, sigma + interval / 2.0, size + 1)
    cdf = np.asarray(_jnorm.cdf(jnp.asarray(x, jnp.float32)))
    kern1d = np.diff(cdf)
    kernel_raw = np.sqrt(np.outer(kern1d, kern1d))
    kernel = kernel_raw / kernel_raw.sum()
    return jnp.asarray(kernel, jnp.float32)[None, None]


def _make_kernel(NR, R, Bb, mask_rows):
    """Kernel over blocks of shape (Bb, C, R, 128); emits one (8, 128) f32
    vector partial per grid step (reduced outside the kernel)."""

    def kernel(x_ref, y_ref, t_ref, part_ref):
        # load in storage dtype, convert on the VPU (halves HBM traffic for bf16)
        x = x_ref[...].astype(jnp.float32)                       # (Bb, C, R, 128)
        y = y_ref[...].astype(jnp.float32)
        t = t_ref[...].astype(jnp.float32)

        # unnormalized alpha: elementwise max across channel slabs (pure VPU);
        # the 1/(1-tau) and 1/(C*H*W) scalings are hoisted out of the kernel.
        alpha_u = jnp.maximum(jnp.max(x, axis=1) - TAU, 0.0)     # (Bb, R, 128)

        # both weighted terms fused; channel sum is elementwise across C slabs
        sq = (y - t) ** 2 + (y - x * x) ** 2                     # (Bb, C, R, 128)
        contrib = alpha_u * jnp.sum(sq, axis=1)                  # (Bb, R, 128)

        if mask_rows:
            # ragged last row-tile: rows past NR hold unspecified data
            row0 = pl.program_id(1) * R
            rows = lax.broadcasted_iota(jnp.int32, (R, 128), 0) + row0
            contrib = jnp.where(rows[None, :, :] < NR, contrib, 0.0)

        if R % 8 == 0:
            # pure-VPU reduction: add vreg tiles elementwise down to (8, 128)
            psum = contrib.reshape(Bb, R // 8, 8, 128).sum(axis=(0, 1))
        else:
            # tiny images (single full-extent row block, R == NR not a multiple
            # of 8): one small cross-sublane reduce, parked in sublane 0
            s = jnp.sum(contrib, axis=(0, 1))                    # (128,)
            sub = lax.broadcasted_iota(jnp.int32, (8, 128), 0)
            psum = jnp.where(sub == 0, s[None, :], 0.0)

        part_ref[...] = psum.reshape(1, 1, 8, 128)

    return kernel


def _vmem_capacity_bytes():
    try:
        return int(pltpu.get_tpu_info().vmem_capacity_bytes)
    except Exception:
        return 64 << 20          # conservative fallback: v7x per-TC VMEM


def hdr_loss(inputs, outputs, targets):
    """Pallas implementation of HDRLoss.forward(inputs, outputs, targets)."""
    B, C, H, W = outputs.shape
    HW = H * W
    NR = pl.cdiv(HW, 128)        # 128-lane rows per (b, c) image

    # ---- lane-dense layout: (B, C, NR, 128) (free reshape when HW % 128 == 0)
    def to_lanes(a):
        a = a.reshape(B, C, HW)
        if HW % 128:
            # rare path (H*W not lane aligned): zero lane-pad is exact because
            # alpha = max(0 - tau, 0) = 0 on padded pixels.
            a = jnp.pad(a, ((0, 0), (0, 0), (0, NR * 128 - HW)))
        return a.reshape(B, C, NR, 128)

    x = to_lanes(inputs)         # storage dtype preserved; f32 convert in-kernel
    y = to_lanes(outputs)
    t = to_lanes(targets)

    bytes_per_elem = sum(a.dtype.itemsize for a in (x, y, t))   # all 3 inputs

    # ---- per-generation VMEM budget (blocks are already sublane-dense) ----
    cap = _vmem_capacity_bytes()                      # 64 MiB v7x, 128 MiB v5e/v6e
    vmem_limit = int(max(32 << 20, min(cap - (8 << 20), 96 << 20)))
    tile_budget = (vmem_limit * 3) // 4               # slack for outputs/internals

    # rows per tile (multiple of 8): double-buffered, 3 inputs
    row_bytes = 2 * C * 128 * bytes_per_elem
    r_max = max(8, (tile_budget // row_bytes) // 8 * 8)

    if NR <= r_max:
        R, num_tiles, mask_rows = NR, 1, False        # full-extent row block
    else:
        num_tiles = pl.cdiv(NR, r_max)
        R = ((pl.cdiv(NR, num_tiles) + 7) // 8) * 8   # balanced, multiple of 8
        num_tiles = pl.cdiv(NR, R)
        mask_rows = (num_tiles * R != NR)

    # ---- fold batch elements into one block when images are small ----
    Bb = 1
    if num_tiles == 1 and B > 1:
        step_bytes = 2 * C * R * 128 * bytes_per_elem
        max_bb = int(max(1, min(B, (4 << 20) // max(step_bytes, 1),
                                tile_budget // max(step_bytes, 1))))
        for d in range(max_bb, 0, -1):                # largest divisor of B
            if B % d == 0:
                Bb = d
                break

    nb = B // Bb
    kernel = _make_kernel(NR, R, Bb, mask_rows)
    in_spec = pl.BlockSpec((Bb, C, R, 128), lambda b, ti: (b, 0, ti, 0))

    partials = pl.pallas_call(
        kernel,
        out_shape=jax.ShapeDtypeStruct((nb, num_tiles, 8, 128), jnp.float32),
        grid=(nb, num_tiles),
        in_specs=[in_spec, in_spec, in_spec],
        out_specs=pl.BlockSpec((1, 1, 8, 128), lambda b, ti: (b, ti, 0, 0)),
        compiler_params=pltpu.CompilerParams(
            # no cross-step accumulation -> both axes parallel (keeps both v7x
            # TensorCores busy even when B == 1); a plain serial loop on v5e/v6e.
            dimension_semantics=("parallel", "parallel"),
            vmem_limit_bytes=vmem_limit),
    )(x, y, t)

    # hoisted scalings: per-batch mean denominator is C*H*W and losses are
    # summed over batch, so one global scale is exact.
    scale = 1.0 / ((1.0 - TAU) * C * H * W)
    return jnp.sum(partials) * scale


def hdr_loss_ref(inputs, outputs, targets):
    """Pure-JAX reference for correctness checking."""
    x = inputs.astype(jnp.float32)
    y = outputs.astype(jnp.float32)
    t = targets.astype(jnp.float32)
    max_c = jnp.maximum(jnp.max(x, axis=1) - TAU, 0.0)      # (B, H, W)
    alpha = (max_c / (1.0 - TAU))[:, None]                  # (B, 1, H, W)
    l1 = jnp.mean(alpha * (y - t) ** 2, axis=(1, 2, 3))
    l2 = jnp.mean(alpha * (y - x ** 2) ** 2, axis=(1, 2, 3))
    return jnp.sum(l1 + l2)


if __name__ == "__main__":
    # Deterministic parameter init (shape from __init__): (1, 1, 5, 5)
    gaussian_kernel = get_gaussian_kernel(size=5, sigma=2)
    assert gaussian_kernel.shape == (1, 1, 5, 5)
    # TODO(synk): separate_loss=True branch (5x5 gaussian illumination /
    # reflectance decomposition) is not part of the default forward and is
    # not implemented here.

    key = jax.random.PRNGKey(0)
    k1, k2, k3 = jax.random.split(key, 3)
    B, C, H, W = 2, 3, 16, 16
    inputs = jax.random.uniform(k1, (B, C, H, W), jnp.float32)   # some alpha > 0
    outputs = jax.random.uniform(k2, (B, C, H, W), jnp.float32)
    targets = jax.random.uniform(k3, (B, C, H, W), jnp.float32)

    loss = jax.block_until_ready(hdr_loss(inputs, outputs, targets))
    ref = jax.block_until_ready(hdr_loss_ref(inputs, outputs, targets))

    assert jnp.allclose(loss, ref, rtol=1e-5, atol=1e-6), (loss, ref)
    print("KERNEL_OK")
</pallas_src>

<mosaic_0001>
module attributes {stable_mosaic.version = 11 : i64} {
  func.func @kernel(%arg0: i32, %arg1: i32, %arg2: memref<2x3x2x128xf32, #tpu.memory_space<vmem>>, %arg3: memref<2x3x2x128xf32, #tpu.memory_space<vmem>>, %arg4: memref<2x3x2x128xf32, #tpu.memory_space<vmem>>, %arg5: memref<1x1x8x128xf32, #tpu.memory_space<vmem>>) attributes {dimension_semantics = [#tpu.dimension_semantics<parallel>, #tpu.dimension_semantics<parallel>], iteration_bounds = array<i64: 1, 1>, scalar_prefetch = 0 : i64, scratch_operands = 0 : i64, tpu.core_type = #tpu.core_type<tc>, window_params = [{transform_indices = @transform_0, window_bounds = array<i64: 2, 3, 2, 128>}, {transform_indices = @transform_1, window_bounds = array<i64: 2, 3, 2, 128>}, {transform_indices = @transform_2, window_bounds = array<i64: 2, 3, 2, 128>}, {transform_indices = @transform_3, window_bounds = array<i64: 1, 1, 8, 128>}]} {
    %c0 = arith.constant 0 : index
    %c0_0 = arith.constant 0 : index
    %c0_1 = arith.constant 0 : index
    %c0_2 = arith.constant 0 : index
    %0 = vector.load %arg2[%c0, %c0_0, %c0_1, %c0_2] : memref<2x3x2x128xf32, #tpu.memory_space<vmem>>, vector<2x3x2x128xf32>
    %c0_3 = arith.constant 0 : index
    %c0_4 = arith.constant 0 : index
    %c0_5 = arith.constant 0 : index
    %c0_6 = arith.constant 0 : index
    %1 = vector.load %arg3[%c0_3, %c0_4, %c0_5, %c0_6] : memref<2x3x2x128xf32, #tpu.memory_space<vmem>>, vector<2x3x2x128xf32>
    %c0_7 = arith.constant 0 : index
    %c0_8 = arith.constant 0 : index
    %c0_9 = arith.constant 0 : index
    %c0_10 = arith.constant 0 : index
    %2 = vector.load %arg4[%c0_7, %c0_8, %c0_9, %c0_10] : memref<2x3x2x128xf32, #tpu.memory_space<vmem>>, vector<2x3x2x128xf32>
    %cst = arith.constant dense<0xFF800000> : vector<2x2x128xf32>
    %3 = vector.multi_reduction <maximumf>, %0, %cst [1] : vector<2x3x2x128xf32> to vector<2x2x128xf32>
    %cst_11 = arith.constant 0.949999988 : f32
    %4 = vector.broadcast %cst_11 : f32 to vector<2x2x128xf32>
    %5 = arith.subf %3, %4 : vector<2x2x128xf32>
    %cst_12 = arith.constant 0.000000e+00 : f32
    %6 = vector.broadcast %cst_12 : f32 to vector<2x2x128xf32>
    %7 = arith.maximumf %5, %6 : vector<2x2x128xf32>
    %8 = arith.subf %1, %2 : vector<2x3x2x128xf32>
    %9 = arith.mulf %8, %8 : vector<2x3x2x128xf32>
    %10 = arith.mulf %0, %0 : vector<2x3x2x128xf32>
    %11 = arith.subf %1, %10 : vector<2x3x2x128xf32>
    %12 = arith.mulf %11, %11 : vector<2x3x2x128xf32>
    %13 = arith.addf %9, %12 : vector<2x3x2x128xf32>
    %cst_13 = arith.constant dense<0.000000e+00> : vector<2x2x128xf32>
    %14 = vector.multi_reduction <add>, %13, %cst_13 [1] : vector<2x3x2x128xf32> to vector<2x2x128xf32>
    %15 = arith.mulf %7, %14 : vector<2x2x128xf32>
    %cst_14 = arith.constant dense<0.000000e+00> : vector<128xf32>
    %16 = vector.multi_reduction <add>, %15, %cst_14 [0, 1] : vector<2x2x128xf32> to vector<128xf32>
    %17 = tpu.iota {dimensions = array<i32: 0>} : vector<8x128xi32>
    %c0_i32 = arith.constant 0 : i32
    %18 = vector.broadcast %c0_i32 : i32 to vector<8x128xi32>
    %19 = arith.cmpi eq, %17, %18 : vector<8x128xi32>
    %20 = vector.shape_cast %16 : vector<128xf32> to vector<1x128xf32>
    %cst_15 = arith.constant 0.000000e+00 : f32
    %21 = vector.shape_cast %20 : vector<1x128xf32> to vector<1x128xf32>
    %22 = vector.broadcast %21 : vector<1x128xf32> to vector<8x128xf32>
    %23 = vector.broadcast %cst_15 : f32 to vector<8x128xf32>
    %24 = arith.select %19, %22, %23 : vector<8x128xi1>, vector<8x128xf32>
    %25 = vector.shape_cast %24 : vector<8x128xf32> to vector<1x1x8x128xf32>
    %c0_16 = arith.constant 0 : index
    %c0_17 = arith.constant 0 : index
    %c0_18 = arith.constant 0 : index
    %c0_19 = arith.constant 0 : index
    %26 = vector.load %arg5[%c0_16, %c0_17, %c0_18, %c0_19] : memref<1x1x8x128xf32, #tpu.memory_space<vmem>>, vector<1x1x8x128xf32>
    tpu.vector_store %arg5[%c0_16, %c0_17, %c0_18, %c0_19], %25 {strides = array<i32>} : memref<1x1x8x128xf32, #tpu.memory_space<vmem>>, vector<1x1x8x128xf32>,
    return
  }
  func.func @transform_0(%arg0: i32, %arg1: i32) -> (i32, i32, i32, i32) {
    %c0_i32 = arith.constant 0 : i32
    %c0_i32_0 = arith.constant 0 : i32
    %c0_i32_1 = arith.constant 0 : i32
    return %arg0, %c0_i32, %arg1, %c0_i32_0 : i32, i32, i32, i32
  }
  func.func @transform_1(%arg0: i32, %arg1: i32) -> (i32, i32, i32, i32) {
    %c0_i32 = arith.constant 0 : i32
    %c0_i32_0 = arith.constant 0 : i32
    %c0_i32_1 = arith.constant 0 : i32
    return %arg0, %c0_i32, %arg1, %c0_i32_0 : i32, i32, i32, i32
  }
  func.func @transform_2(%arg0: i32, %arg1: i32) -> (i32, i32, i32, i32) {
    %c0_i32 = arith.constant 0 : i32
    %c0_i32_0 = arith.constant 0 : i32
    %c0_i32_1 = arith.constant 0 : i32
    return %arg0, %c0_i32, %arg1, %c0_i32_0 : i32, i32, i32, i32
  }
  func.func @transform_3(%arg0: i32, %arg1: i32) -> (i32, i32, i32, i32) {
    %c0_i32 = arith.constant 0 : i32
    %c0_i32_0 = arith.constant 0 : i32
    %c0_i32_1 = arith.constant 0 : i32
    return %arg0, %arg1, %c0_i32, %c0_i32_0 : i32, i32, i32, i32
  }
}

</mosaic_0001>

<bundles_post_ra>
// kernel: tpu_custom_call.1
= control target key start
LH: loop header
LB: loop body
LE: loop exit
PB: predicated region body
PF: predicated region fallthrough
CT: control target
= control target key end

     0   :  { %8 = vsyncpa [#allocation3], 0  ;;  %s373_s0 = inlined_call_operand.hbm [shape: f32[2,3,2,128], index: 0, kind: input, shape index: {}]   ;;  %s374_s1 = inlined_call_operand.hbm [shape: f32[2,3,2,128], index: 1, kind: input, shape index: {}]   ;;  %s375_s2 = inlined_call_operand.hbm [shape: f32[2,3,2,128], index: 2, kind: input, shape index: {}]   ;;  %s376_s3 = inlined_call_operand.hbm [shape: f32[1,1,8,128], index: 3, kind: output, shape index: {}]  }
   0x1   :  { %9 = vsyncpa [#allocation6], 0 }
   0x2   :  { %10 = vsyncpa [#allocation4], 0  ;;  %s269_s12 = smov [#allocation5]   ;;  %s270_s14 = smov [#allocation2]  }
   0x3   :  { %s28_s13 = sshll.u32 %s269_s12, 4  ;;  %s16_s15 = sshll.u32 %s270_s14, 4  ;;  %s29_s13 = int_to_ptr.vmem [resolvable:$true] %s28_s13  ;;  %s295_s15 = int_to_ptr.vmem [resolvable:$true] %s16_s15 }
   0x4   :  { %s175_s18 = scalar_lea.hbm %s374_s1, 192 }
   0x5   :  { %p176_p0 = scmp.ne.s32.totalorder %s374_s1, %s175_s18  ;;  %p179_p1 = scmp.lt.u32.totalorder %s175_s18, %s374_s1 }
   0x7   :  { %p181_p2 = pnand %p179_p1, %p176_p0 }
   0x9   :  { %184 = shalt.err (!%p181_p2)
}
   0xa   :  { %s185_s23 = scalar_lea.vmem %s29_s13, 192  ;;  %p190_p4 = scmp.lt.s32.totalorder %s29_s13, %s29_s13 }
   0xb   :  { %p186_p3 = scmp.ne.s32.totalorder %s29_s13, %s185_s23  ;;  %p191_p5 = scmp.lt.s32.totalorder %s185_s23, %s185_s23 }
   0xd   :  { %p192_p6 = por %p191_p5, %p190_p4 }
   0xf   :  { %p193_p7 = pnand %p192_p6, %p186_p3 }
  0x11   :  { %196 = shalt.err (!%p193_p7)
}
  0x12   :  { %s271_s24 = smov 32   ;;  %s272_s25 = smov 2  }
  0x13   :  { %34 = dma.hbm_to_vmem [thread:$0]  %s374_s1, 192, %s29_s13, [#allocation6], %s271_s24, %s271_s24, %s272_s25  }
  0x14   :  { %s197_s30 = scalar_lea.hbm %s373_s0, 192 }
  0x15   :  { %p198_p8 = scmp.ne.s32.totalorder %s373_s0, %s197_s30  ;;  %p201_p9 = scmp.lt.u32.totalorder %s197_s30, %s373_s0 }
  0x17   :  { %p203_p10 = pnand %p201_p9, %p198_p8 }
  0x19   :  { %206 = shalt.err (!%p203_p10)
}
  0x1a   :  { %s207_s8 = scalar_lea.vmem %s295_s15, 192  ;;  %p212_p12 = scmp.lt.s32.totalorder %s295_s15, %s295_s15 }
  0x1b   :  { %p208_p11 = scmp.ne.s32.totalorder %s295_s15, %s207_s8  ;;  %p213_p13 = scmp.lt.s32.totalorder %s207_s8, %s207_s8 }
  0x1d   :  { %p214_p0 = por %p213_p13, %p212_p12 }
  0x1f   :  { %p215_p1 = pnand %p214_p0, %p208_p11 }
  0x21   :  { %218 = shalt.err (!%p215_p1)
}
  0x22   :  { %22 = dma.hbm_to_vmem [thread:$0]  %s373_s0, 192, %s295_s15, [#allocation3], %s271_s24, %s271_s24, %s272_s25  }
  0x23   :  { %s273_s10 = smov [#allocation7]   ;;  %s219_s14 = scalar_lea.hbm %s375_s2, 192 }
  0x24   :  { %s40_s11 = sshll.u32 %s273_s10, 4  ;;  %p220_p2 = scmp.ne.s32.totalorder %s375_s2, %s219_s14  ;;  %s41_s11 = int_to_ptr.vmem [resolvable:$true] %s40_s11 }
  0x25   :  { %p223_p3 = scmp.lt.u32.totalorder %s219_s14, %s375_s2 }
  0x27   :  { %p225_p4 = pnand %p223_p3, %p220_p2 }
  0x29   :  { %228 = shalt.err (!%p225_p4)
}
  0x2a   :  { %s229_s20 = scalar_lea.vmem %s41_s11, 192  ;;  %p234_p6 = scmp.lt.s32.totalorder %s41_s11, %s41_s11 }
  0x2b   :  { %p230_p5 = scmp.ne.s32.totalorder %s41_s11, %s229_s20  ;;  %p235_p7 = scmp.lt.s32.totalorder %s229_s20, %s229_s20 }
  0x2d   :  { %p236_p8 = por %p235_p7, %p234_p6 }
  0x2f   :  { %p237_p9 = pnand %p236_p8, %p230_p5 }
  0x31   :  { %240 = shalt.err (!%p237_p9)
}
  0x32   :  { %46 = dma.hbm_to_vmem [thread:$0]  %s375_s2, 192, %s41_s11, [#allocation6], %s271_s24, %s271_s24, %s272_s25  }
  0x33   :  { %263 = dma.done.wait [#allocation3], 192  }
  0x34   :  { %264 = vsyncadd [#allocation3], 4294967104 }
  0x35   :  { %265 = dma.done.wait [#allocation6], 384  }
  0x36   :  { %266 = vsyncadd [#allocation6], 4294966912  ;;  %vm74_vm0 = vcmask 1041408   ;;  %v56_v0 = vld [vmem:[#allocation2] sm:$0x3]  ;;  %s274_s2 = smov [#allocation8]  }
  0x37   :  { %v57_v1 = vld [vmem:[#allocation2 + $0x2] sm:$0x3]  ;;  %v58_v2 = vld [vmem:[#allocation2 + $0x4] sm:$0x3]  ;;  %v59_v3 = vld [vmem:[#allocation2 + $0x6] sm:$0x3]  ;;  %v101_v6 = vmul.f32 %v56_v0, %v56_v0 }
  0x38   :  { %v60_v4 = vld [vmem:[#allocation2 + $0x8] sm:$0x3]  ;;  %v61_v5 = vld [vmem:[#allocation2 + $0xa] sm:$0x3]  ;;  %v102_v7 = vmul.f32 %v57_v1, %v57_v1  ;;  %v103_v8 = vmul.f32 %v58_v2, %v58_v2  ;;  %v62_v9 = vld [vmem:[#allocation5] sm:$0x3]  ;;  %v104_v12 = vmul.f32 %v59_v3, %v59_v3 }
  0x39   :  { %v63_v10 = vld [vmem:[#allocation5 + $0x2] sm:$0x3]  ;;  %v64_v11 = vld [vmem:[#allocation5 + $0x4] sm:$0x3]  ;;  %v105_v13 = vmul.f32 %v60_v4, %v60_v4  ;;  %v106_v14 = vmul.f32 %v61_v5, %v61_v5  ;;  %v65_v15 = vld [vmem:[#allocation5 + $0x6] sm:$0x3]  ;;  %v107_v18 = vsub.f32 %v62_v9, %v101_v6 }
  0x3a   :  { %v66_v16 = vld [vmem:[#allocation5 + $0x8] sm:$0x3]  ;;  %v67_v17 = vld [vmem:[#allocation5 + $0xa] sm:$0x3]  ;;  %v108_v19 = vsub.f32 %v63_v10, %v102_v7  ;;  %v68_v20 = vld [vmem:[#allocation7] sm:$0x3]  ;;  %v109_v23 = vsub.f32 %v64_v11, %v103_v8  ;;  %v110_v24 = vsub.f32 %v65_v15, %v104_v12 }
  0x3b   :  { %v69_v21 = vld [vmem:[#allocation7 + $0x2] sm:$0x3]  ;;  %v70_v22 = vld [vmem:[#allocation7 + $0x4] sm:$0x3]  ;;  %v111_v25 = vsub.f32 %v66_v16, %v105_v13  ;;  %v112_v26 = vsub.f32 %v67_v17, %v106_v14  ;;  %v71_v27 = vld [vmem:[#allocation7 + $0x6] sm:$0x3]  ;;  %v89_v30 = vsub.f32 %v62_v9, %v68_v20  ;;  %v113_v33 = vmul.f32 %v107_v18, %v107_v18 }
  0x3c   :  { %v72_v28 = vld [vmem:[#allocation7 + $0x8] sm:$0x3]  ;;  %v73_v29 = vld [vmem:[#allocation7 + $0xa] sm:$0x3]  ;;  %v90_v31 = vsub.f32 %v63_v10, %v69_v21  ;;  %v91_v32 = vsub.f32 %v64_v11, %v70_v22  ;;  %v75_v34 = vsel %vm74_vm0, %v56_v0, -inf  ;;  %v76_v35 = vsel %vm74_vm0, %v57_v1, -inf }
  0x3d   :  { %v77_v36 = vsel %vm74_vm0, %v58_v2, -inf  ;;  %v80_v37 = vsel %vm74_vm0, %v59_v3, -inf  ;;  %v81_v39 = vsel %vm74_vm0, %v60_v4, -inf  ;;  %v82_v40 = vsel %vm74_vm0, %v61_v5, -inf  ;;  %s157_s21 = sshll.u32 %s274_s2, 4  ;;  %s158_s21 = int_to_ptr.vmem [resolvable:$true] %s157_s21 }
  0x3e   :  { %v78_v38 = vmax.f32 %v75_v34, %v77_v36  ;;  %v92_v41 = vsub.f32 %v65_v15, %v71_v27  ;;  %v83_v42 = vmax.f32 %v80_v37, %v82_v40  ;;  %v93_v43 = vsub.f32 %v66_v16, %v72_v28  ;;  %s241_s22 = scalar_lea.vmem %s158_s21, 128  ;;  %p246_p11 = scmp.lt.s32.totalorder %s158_s21, %s158_s21 }
  0x3f   :  { %v94_v44 = vsub.f32 %v67_v17, %v73_v29  ;;  %v95_v45 = vmul.f32 %v89_v30, %v89_v30  ;;  %v96_v47 = vmul.f32 %v90_v31, %v90_v31  ;;  %v97_v48 = vmul.f32 %v91_v32, %v91_v32  ;;  %p242_p10 = scmp.ne.s32.totalorder %s158_s21, %s241_s22  ;;  %p247_p12 = scmp.lt.s32.totalorder %s241_s22, %s241_s22 }
  0x40   :  { %v79_v46 = vmax.f32 %v78_v38, %v76_v35  ;;  %v98_v49 = vmul.f32 %v92_v41, %v92_v41  ;;  %v84_v50 = vmax.f32 %v83_v42, %v81_v39  ;;  %v99_v51 = vmul.f32 %v93_v43, %v93_v43 }
  0x41   :  { %v100_v52 = vmul.f32 %v94_v44, %v94_v44  ;;  %v114_v53 = vmul.f32 %v108_v19, %v108_v19  ;;  %v115_v55 = vmul.f32 %v109_v23, %v109_v23  ;;  %v116_v56 = vmul.f32 %v110_v24, %v110_v24  ;;  %p248_p13 = por %p247_p12, %p246_p11 }
  0x42   :  { %v167_v54 = vadd.f32 -0.95, %v79_v46  ;;  %v117_v57 = vmul.f32 %v111_v25, %v111_v25  ;;  %v168_v58 = vadd.f32 -0.95, %v84_v50  ;;  %v118_v59 = vmul.f32 %v112_v26, %v112_v26 }
  0x43   :  { %v119_v60 = vadd.f32 %v113_v33, %v95_v45  ;;  %v120_v61 = vadd.f32 %v114_v53, %v96_v47  ;;  %v121_v62 = vadd.f32 %v115_v55, %v97_v48  ;;  %v122_v63 = vadd.f32 %v116_v56, %v98_v49  ;;  %p249_p0 = pnand %p248_p13, %p242_p10 }
  0x44   :  { %v123_v0 = vadd.f32 %v117_v57, %v99_v51  ;;  %v87_v1 = vmax.f32 %v167_v54, 0.0  ;;  %v124_v2 = vadd.f32 %v118_v59, %v100_v52  ;;  %v88_v9 = vmax.f32 %v168_v58, 0.0 }
  0x45   :  { %v125_v3 = vsel %vm74_vm0, %v119_v60, 0.0  ;;  %v126_v4 = vsel %vm74_vm0, %v120_v61, 0.0  ;;  %v128_v6 = vsel %vm74_vm0, %v121_v62, 0.0  ;;  %v130_v7 = vsel %vm74_vm0, %v122_v63, 0.0 }
  0x46   :  { %v127_v5 = vadd.f32 %v126_v4, %v125_v3  ;;  %v131_v8 = vsel %vm74_vm0, %v123_v0, 0.0  ;;  %v133_v11 = vsel %vm74_vm0, %v124_v2, 0.0  ;;  %v146_v20 = vlaneseq }
  0x47   :  { %v132_v10 = vadd.f32 %v131_v8, %v130_v7 }
  0x48   :  { %v129_v12 = vadd.f32 %v128_v6, %v127_v5  ;;  %v147_v23 = vshrl.u32 %v146_v20, 7 }
  0x49   :  { %v134_v13 = vadd.f32 %v133_v11, %v132_v10 }
  0x4a   :  { %v135_v14 = vmul.f32 %v129_v12, %v87_v1  ;;  %vm148_vm1 = vcmp.eq.s32.totalorder %v147_v23, 0 }
  0x4b   :  { %v136_v15 = vmul.f32 %v134_v13, %v88_v9 }
  0x4c   :  { %v137_v16 = vsel %vm74_vm0, %v135_v14, 0.0 }
  0x4d   :  { %v138_v17 = vsel %vm74_vm0, %v136_v15, 0.0 }
  0x4e   :  { %v139_v18 = vadd.f32 %v138_v17, %v137_v16 }
  0x50   :  { %v140_v19 = vrot.slane %v139_v18, 4 }
  0x52   :  { %v141_v21 = vadd.f32 %v140_v19, %v139_v18 }
  0x54   :  { %v142_v22 = vrot.slane %v141_v21, 2 }
  0x56   :  { %v143_v24 = vadd.f32 %v142_v22, %v141_v21 }
  0x58   :  { %v144_v25 = vrot.slane %v143_v24, 1 }
  0x5a   :  { %v145_v26 = vadd.f32 %v144_v25, %v143_v24 }
  0x5c   :  { %v149_v27 = vsel %vm148_vm1, %v145_v26, 0.0 }
  0x5d   :  { %150 = vst [vmem:[#allocation8] sm:$0xff] %v149_v27 }
  0x5e   :  { %252 = shalt.err (!%p249_p0)
}
  0x5f   :  { %s253_s25 = scalar_lea.hbm %s376_s3, 128 }
  0x60   :  { %p254_p1 = scmp.ne.s32.totalorder %s376_s3, %s253_s25  ;;  %p257_p2 = scmp.lt.u32.totalorder %s253_s25, %s376_s3 }
  0x62   :  { %p259_p3 = pnand %p257_p2, %p254_p1 }
  0x64   :  { %262 = shalt.err (!%p259_p3)
}
  0x65   :  { %160 = dma.vmem_to_hbm [thread:$0]  %s158_s21, 128, %s376_s3, [#allocation4]  }
  0x66   :  { %267 = dma.done.wait [#allocation4], 128  }
  0x67   :  { %268 = vsyncadd [#allocation4], 4294967168 }
  0x68   :  { %164 = vsyncpa [#allocation3], 1 }
  0x69   :  { %165 = vsyncpa [#allocation6], 1 }
  0x6a   :  { %166 = vsyncpa [#allocation4], 1 }

</bundles_post_ra>
